<compile_context>
chip_gen: v7x
topology: tpu7x:2x2x1
jax: 0.10.0
libtpu: 0.0.40
codegen_flags: <defaults>
</compile_context>

<pallas_src>
import math

import jax
import jax.numpy as jnp
from jax import lax
from jax.experimental import pallas as pl
from jax.experimental.pallas import tpu as pltpu

_INV_SQRT2 = 1.0 / math.sqrt(2.0)


def _gelu_exact(x):
    # erf-based GELU, matches torch.nn.GELU() default.
    return 0.5 * x * (1.0 + lax.erf(x * jnp.float32(_INV_SQRT2)))


# ----------------------------------------------------------------------------
# Kernels
# ----------------------------------------------------------------------------
def _ffwd_resident_kernel(x_ref, w1_ref, b1_ref, w2_ref, b2_ref, o_ref):
    """Weight-resident path: one (tile_m, C) row tile, full H in one pass.

    x_ref : (tile_m, C)   w1_ref: (C, H)   b1_ref: (1, H)
    w2_ref: (H, C)        b2_ref: (1, C)   o_ref : (tile_m, C)
    """
    h = jnp.dot(x_ref[...], w1_ref[...], preferred_element_type=jnp.float32)
    h = _gelu_exact(h + b1_ref[...].astype(jnp.float32))
    out = jnp.dot(h.astype(w2_ref.dtype), w2_ref[...],
                  preferred_element_type=jnp.float32)
    # Dropout in eval mode == identity.
    o_ref[...] = (out + b2_ref[...].astype(jnp.float32)).astype(o_ref.dtype)


def _ffwd_streamed_kernel(x_ref, w1_ref, b1_ref, w2_ref, b2_ref, o_ref, acc_ref):
    """Streamed fallback: one (tile_m, C) row tile x one tile_h hidden chunk.

    x_ref : (tile_m, C)   w1_ref: (C, tile_h)   b1_ref: (1, tile_h)
    w2_ref: (tile_h, C)   b2_ref: (1, C)
    o_ref : (tile_m, C)   acc_ref: (tile_m, C) f32 scratch accumulator
    """
    j = pl.program_id(1)

    @pl.when(j == 0)
    def _init():
        # Fold the second bias into the accumulator init (saves a full
        # (tile_m, C) vld+vadd pass at finalize).
        acc_ref[...] = jnp.broadcast_to(b2_ref[...].astype(jnp.float32),
                                        acc_ref.shape)

    h = jnp.dot(x_ref[...], w1_ref[...], preferred_element_type=jnp.float32)
    h = _gelu_exact(h + b1_ref[...].astype(jnp.float32))
    acc_ref[...] += jnp.dot(h.astype(w2_ref.dtype), w2_ref[...],
                            preferred_element_type=jnp.float32)

    @pl.when(j == pl.num_programs(1) - 1)
    def _finalize():
        # Dropout in eval mode == identity.
        o_ref[...] = acc_ref[...].astype(o_ref.dtype)


# ----------------------------------------------------------------------------
# Wrapper
# ----------------------------------------------------------------------------
def _round_up(x, m):
    return ((x + m - 1) // m) * m


def _nbytes(shape, dtype):
    return math.prod(shape) * jnp.dtype(dtype).itemsize


def _vmem_capacity_bytes():
    try:
        return int(pltpu.get_tpu_info().vmem_capacity_bytes)
    except Exception:
        return 64 << 20  # conservative: v7x per-TensorCore VMEM


def feed_forward(x, w1, b1, w2, b2, *, tile_m=None, tile_h=None,
                 compute_dtype=None, force_streamed=False, interpret=False):
    """Eval-mode FeedForward: Linear(C->H) -> GELU -> Linear(H->C) -> Dropout(id).

    x:  (B, T, C)
    w1: (C, H), b1: (H,)   (weights stored input-major, i.e. torch weight.T)
    w2: (H, C), b2: (C,)

    compute_dtype=jnp.bfloat16 casts x/W1/W2 for full MXU rate (f32 accumulate
    inside; expect ~1e-2 relative mixed-precision deviation vs a pure-f32 ref).
    """
    B, T, C = x.shape
    C_, H = w1.shape
    assert C_ == C and w2.shape == (H, C) and b1.shape == (H,) and b2.shape == (C,)

    if compute_dtype is not None:
        x = x.astype(compute_dtype)
        w1 = w1.astype(compute_dtype)
        w2 = w2.astype(compute_dtype)

    out_dtype = x.dtype
    M = B * T
    x2d = x.reshape(M, C)

    b1_f32 = b1.astype(jnp.float32)
    b2_2d = b2.reshape(1, C).astype(jnp.float32)

    vmem_cap = _vmem_capacity_bytes()
    vmem_budget = int(0.80 * vmem_cap)            # headroom for compiler temps
    vmem_ceiling = int(0.85 * vmem_cap)           # never request > physical
    row_align = 16 if x2d.dtype == jnp.dtype(jnp.bfloat16) else 8
    itemsize = jnp.dtype(out_dtype).itemsize

    def clamp_tm(want):
        tm = max(row_align, min(_round_up(want, row_align), _round_up(M, row_align)))
        return M if tm >= M else tm

    # ------------------------- weight-resident path --------------------------
    resident_weight_bytes = (2 * _nbytes((C, H), w1.dtype)
                             + 2 * _nbytes((H, C), w2.dtype)
                             + 2 * _nbytes((1, H), jnp.float32)
                             + 2 * _nbytes((1, C), jnp.float32))

    def resident_step_bytes(tm):
        return (resident_weight_bytes
                + 2 * _nbytes((tm, C), x2d.dtype)     # x tile (double-buffered)
                + 2 * _nbytes((tm, C), out_dtype)     # out tile (double-buffered)
                + _nbytes((tm, H), jnp.float32)       # GELU intermediate
                + _nbytes((tm, C), jnp.float32))      # f32 result pre-cast

    tm = clamp_tm(tile_m if tile_m is not None else 1024)
    while resident_step_bytes(tm) > vmem_budget:
        new_tm = max(row_align, _round_up(tm // 2, row_align))
        if new_tm == tm:
            break
        tm = new_tm
    if tm >= M:
        tm = M

    use_resident = (not force_streamed) and resident_step_bytes(tm) <= vmem_budget

    if use_resident:
        num_m = pl.cdiv(M, tm)
        # Nudge to an even number of row tiles for v7x megacore balance.
        if num_m > 1 and num_m % 2 == 1:
            cand = max(row_align, _round_up(pl.cdiv(M, num_m + 1), row_align))
            if pl.cdiv(M, cand) % 2 == 0 and resident_step_bytes(cand) <= vmem_budget:
                tm = cand
                num_m = pl.cdiv(M, tm)

        b1_2d = b1_f32.reshape(1, H)
        cost = pl.CostEstimate(
            flops=4 * M * C * H,
            transcendentals=M * H,
            bytes_accessed=int(x2d.size * x2d.dtype.itemsize
                               + M * C * itemsize
                               + w1.size * w1.dtype.itemsize
                               + w2.size * w2.dtype.itemsize
                               + (H + C) * 4))
        vmem_limit = int(min(max(2 * resident_step_bytes(tm), 32 << 20),
                             vmem_ceiling))

        out2d = pl.pallas_call(
            _ffwd_resident_kernel,
            out_shape=jax.ShapeDtypeStruct((M, C), out_dtype),
            grid_spec=pltpu.PrefetchScalarGridSpec(
                num_scalar_prefetch=0,
                grid=(num_m,),
                in_specs=[
                    pl.BlockSpec((tm, C), lambda i: (i, 0)),   # x rows (streamed)
                    pl.BlockSpec((C, H), lambda i: (0, 0)),    # W1 (VMEM-resident)
                    pl.BlockSpec((1, H), lambda i: (0, 0)),    # b1 (resident)
                    pl.BlockSpec((H, C), lambda i: (0, 0)),    # W2 (VMEM-resident)
                    pl.BlockSpec((1, C), lambda i: (0, 0)),    # b2 (resident)
                ],
                out_specs=pl.BlockSpec((tm, C), lambda i: (i, 0)),
            ),
            compiler_params=pltpu.CompilerParams(
                dimension_semantics=("parallel",),
                vmem_limit_bytes=vmem_limit),
            cost_estimate=cost,
            interpret=interpret,
        )(x2d, w1, b1_2d, w2, b2_2d)
        return out2d.reshape(B, T, C)

    # --------------------- streamed hidden-chunk fallback --------------------
    th_floor = 256 if _round_up(H, 128) >= 256 else 128
    th = max(128, min(_round_up(tile_h if tile_h is not None else 512, 128),
                      _round_up(H, 128)))
    tm = clamp_tm(tile_m if tile_m is not None else 1024)

    def streamed_step_bytes(tm, th):
        return (2 * _nbytes((tm, C), x2d.dtype)       # x tile
                + 2 * _nbytes((C, th), w1.dtype)      # W1 chunk
                + 2 * _nbytes((1, th), jnp.float32)   # b1 chunk
                + 2 * _nbytes((th, C), w2.dtype)      # W2 chunk
                + 2 * _nbytes((1, C), jnp.float32)    # b2
                + 2 * _nbytes((tm, C), out_dtype)     # out tile
                + _nbytes((tm, C), jnp.float32)       # accumulator scratch
                + _nbytes((tm, th), jnp.float32))     # GELU intermediate

    while streamed_step_bytes(tm, th) > vmem_budget and th > th_floor:
        th = max(th_floor, _round_up(th // 2, 128))
    while streamed_step_bytes(tm, th) > vmem_budget:
        new_tm = max(row_align, _round_up(tm // 2, row_align))
        if new_tm == tm:
            break
        tm = new_tm
    if tm >= M:
        tm = M

    Hp = _round_up(H, th)
    num_h = Hp // th
    num_m = pl.cdiv(M, tm)

    # Pad only the weight H axis so hidden chunks never read undefined columns;
    # padding contributes exactly 0 (GELU(0) == 0 and padded W2 rows are 0).
    if Hp != H:
        w1 = jnp.pad(w1, ((0, 0), (0, Hp - H)))
        b1_f32 = jnp.pad(b1_f32, (0, Hp - H))
        w2 = jnp.pad(w2, ((0, Hp - H), (0, 0)))
    b1_2d = b1_f32.reshape(1, Hp)

    cost = pl.CostEstimate(
        flops=4 * M * C * H,
        transcendentals=M * Hp,
        bytes_accessed=int(x2d.size * x2d.dtype.itemsize
                           + M * C * itemsize
                           + num_m * (w1.size * w1.dtype.itemsize
                                      + w2.size * w2.dtype.itemsize
                                      + (Hp + C) * 4)))
    vmem_limit = int(min(max(2 * streamed_step_bytes(tm, th), 32 << 20),
                         vmem_ceiling))

    out2d = pl.pallas_call(
        _ffwd_streamed_kernel,
        out_shape=jax.ShapeDtypeStruct((M, C), out_dtype),
        grid_spec=pltpu.PrefetchScalarGridSpec(
            num_scalar_prefetch=0,
            grid=(num_m, num_h),                               # H (reduction) last
            in_specs=[
                pl.BlockSpec((tm, C), lambda i, j: (i, 0)),    # x rows (resident over j)
                pl.BlockSpec((C, th), lambda i, j: (0, j)),    # W1 hidden chunk
                pl.BlockSpec((1, th), lambda i, j: (0, j)),    # b1 hidden chunk
                pl.BlockSpec((th, C), lambda i, j: (j, 0)),    # W2 hidden chunk
                pl.BlockSpec((1, C), lambda i, j: (0, 0)),     # b2 (grid-invariant)
            ],
            out_specs=pl.BlockSpec((tm, C), lambda i, j: (i, 0)),
            scratch_shapes=[pltpu.VMEM((tm, C), jnp.float32)],
        ),
        compiler_params=pltpu.CompilerParams(
            dimension_semantics=("parallel", "arbitrary"),
            vmem_limit_bytes=vmem_limit),
        cost_estimate=cost,
        interpret=interpret,
    )(x2d, w1, b1_2d, w2, b2_2d)
    return out2d.reshape(B, T, C)


def _ref_feed_forward(x, w1, b1, w2, b2):
    h = jnp.einsum("btc,ch->bth", x, w1) + b1
    h = 0.5 * h * (1.0 + lax.erf(h / jnp.sqrt(2.0)))
    return jnp.einsum("bth,hc->btc", h, w2) + b2


if __name__ == "__main__":
    # config.n_embd = 32 -> hidden = 4*32 = 128; p_dropout irrelevant in eval mode.
    B, T, C = 2, 8, 32
    H = 4 * C

    key = jax.random.PRNGKey(0)
    kx, kw1, kb1, kw2, kb2, kx2, kw3, kb3, kw4, kb4 = jax.random.split(key, 10)

    x = jax.random.normal(kx, (B, T, C), dtype=jnp.float32)

    # Deterministic PyTorch-Linear-style init: U(-1/sqrt(fan_in), 1/sqrt(fan_in)).
    lim1 = 1.0 / math.sqrt(C)
    w1 = jax.random.uniform(kw1, (C, H), minval=-lim1, maxval=lim1, dtype=jnp.float32)
    b1 = jax.random.uniform(kb1, (H,), minval=-lim1, maxval=lim1, dtype=jnp.float32)
    lim2 = 1.0 / math.sqrt(H)
    w2 = jax.random.uniform(kw2, (H, C), minval=-lim2, maxval=lim2, dtype=jnp.float32)
    b2 = jax.random.uniform(kb2, (C,), minval=-lim2, maxval=lim2, dtype=jnp.float32)

    ref = _ref_feed_forward(x, w1, b1, w2, b2)

    # 1) Weight-resident path, default tiling (single row tile at this toy size).
    out = jax.block_until_ready(feed_forward(x, w1, b1, w2, b2))
    assert out.shape == (B, T, C)
    assert jnp.allclose(out, ref, atol=1e-4, rtol=1e-4), float(jnp.max(jnp.abs(out - ref)))

    # 2) Multi row-tile grid (2 "parallel" steps -> pipelining / megacore split).
    out2 = jax.block_until_ready(feed_forward(x, w1, b1, w2, b2, tile_m=8))
    assert jnp.allclose(out2, ref, atol=1e-4, rtol=1e-4)

    # 3) Ragged B*T (15 rows): Pallas partial final block, no x padding copy.
    xr = jax.random.normal(kx2, (3, 5, C), dtype=jnp.float32)
    refr = _ref_feed_forward(xr, w1, b1, w2, b2)
    outr = jax.block_until_ready(feed_forward(xr, w1, b1, w2, b2, tile_m=8))
    assert jnp.allclose(outr, refr, atol=1e-4, rtol=1e-4)

    # 4) bf16 MXU operands (full MXU rate); looser mixed-precision tolerance.
    outb = jax.block_until_ready(
        feed_forward(x, w1, b1, w2, b2, compute_dtype=jnp.bfloat16))
    assert jnp.allclose(outb.astype(jnp.float32), ref, atol=5e-2, rtol=5e-2)

    # 5) Streamed hidden-chunk fallback (forced) with a real reduction axis.
    C2, H2 = 128, 4 * 128
    x3 = jax.random.normal(kx2, (B, T, C2), dtype=jnp.float32)
    l1 = 1.0 / math.sqrt(C2)
    w3 = jax.random.uniform(kw3, (C2, H2), minval=-l1, maxval=l1, dtype=jnp.float32)
    b3 = jax.random.uniform(kb3, (H2,), minval=-l1, maxval=l1, dtype=jnp.float32)
    l2 = 1.0 / math.sqrt(H2)
    w4 = jax.random.uniform(kw4, (H2, C2), minval=-l2, maxval=l2, dtype=jnp.float32)
    b4 = jax.random.uniform(kb4, (C2,), minval=-l2, maxval=l2, dtype=jnp.float32)
    ref3 = _ref_feed_forward(x3, w3, b3, w4, b4)
    out3 = jax.block_until_ready(
        feed_forward(x3, w3, b3, w4, b4, tile_m=8, tile_h=128, force_streamed=True))
    assert jnp.allclose(out3, ref3, atol=1e-4, rtol=1e-4)

    print("KERNEL_OK")
</pallas_src>

<mosaic_0001>
module attributes {stable_mosaic.version = 11 : i64} {
  func.func @_ffwd_resident_kernel(%arg0: i32, %arg1: memref<16x32xf32, #tpu.memory_space<vmem>>, %arg2: memref<32x128xf32, #tpu.memory_space<vmem>>, %arg3: memref<1x128xf32, #tpu.memory_space<vmem>>, %arg4: memref<128x32xf32, #tpu.memory_space<vmem>>, %arg5: memref<1x32xf32, #tpu.memory_space<vmem>>, %arg6: memref<16x32xf32, #tpu.memory_space<vmem>>) attributes {dimension_semantics = [#tpu.dimension_semantics<parallel>], iteration_bounds = array<i64: 1>, scalar_prefetch = 0 : i64, scratch_operands = 0 : i64, tpu.core_type = #tpu.core_type<tc>, window_params = [{transform_indices = @transform_0, window_bounds = array<i64: 16, 32>}, {pipeline_mode = #tpu.pipeline_mode<synchronous>, transform_indices = @transform_1, window_bounds = array<i64: 32, 128>}, {pipeline_mode = #tpu.pipeline_mode<synchronous>, transform_indices = @transform_2, window_bounds = array<i64: 1, 128>}, {pipeline_mode = #tpu.pipeline_mode<synchronous>, transform_indices = @transform_3, window_bounds = array<i64: 128, 32>}, {pipeline_mode = #tpu.pipeline_mode<synchronous>, transform_indices = @transform_4, window_bounds = array<i64: 1, 32>}, {transform_indices = @transform_5, window_bounds = array<i64: 16, 32>}]} {
    %c0 = arith.constant 0 : index
    %c0_0 = arith.constant 0 : index
    %0 = vector.load %arg1[%c0, %c0_0] : memref<16x32xf32, #tpu.memory_space<vmem>>, vector<16x32xf32>
    %c0_1 = arith.constant 0 : index
    %c0_2 = arith.constant 0 : index
    %1 = vector.load %arg2[%c0_1, %c0_2] : memref<32x128xf32, #tpu.memory_space<vmem>>, vector<32x128xf32>
    %cst = arith.constant dense<0.000000e+00> : vector<16x128xf32>
    %2 = tpu.matmul %0, %1, %cst {dimension_numbers = #tpu.dot_dimension_numbers<[1], [0], [0], [1], [0, 0, 1, 1], [], []>} : vector<16x32xf32>, vector<32x128xf32>, vector<16x128xf32> -> vector<16x128xf32>
    %c0_3 = arith.constant 0 : index
    %c0_4 = arith.constant 0 : index
    %3 = vector.load %arg3[%c0_3, %c0_4] : memref<1x128xf32, #tpu.memory_space<vmem>>, vector<1x128xf32>
    %4 = vector.broadcast %3 : vector<1x128xf32> to vector<16x128xf32>
    %5 = arith.addf %2, %4 : vector<16x128xf32>
    %cst_5 = arith.constant 5.000000e-01 : f32
    %6 = vector.broadcast %cst_5 : f32 to vector<16x128xf32>
    %7 = arith.mulf %6, %5 : vector<16x128xf32>
    %cst_6 = arith.constant 0.707106769 : f32
    %8 = vector.broadcast %cst_6 : f32 to vector<16x128xf32>
    %9 = arith.mulf %5, %8 : vector<16x128xf32>
    %10 = math.erf %9 : vector<16x128xf32>
    %cst_7 = arith.constant 1.000000e+00 : f32
    %11 = vector.broadcast %cst_7 : f32 to vector<16x128xf32>
    %12 = arith.addf %11, %10 : vector<16x128xf32>
    %13 = arith.mulf %7, %12 : vector<16x128xf32>
    %c0_8 = arith.constant 0 : index
    %c0_9 = arith.constant 0 : index
    %14 = vector.load %arg4[%c0_8, %c0_9] : memref<128x32xf32, #tpu.memory_space<vmem>>, vector<128x32xf32>
    %cst_10 = arith.constant dense<0.000000e+00> : vector<16x32xf32>
    %15 = tpu.matmul %13, %14, %cst_10 {dimension_numbers = #tpu.dot_dimension_numbers<[1], [0], [0], [1], [0, 0, 1, 1], [], []>} : vector<16x128xf32>, vector<128x32xf32>, vector<16x32xf32> -> vector<16x32xf32>
    %c0_11 = arith.constant 0 : index
    %c0_12 = arith.constant 0 : index
    %16 = vector.load %arg5[%c0_11, %c0_12] : memref<1x32xf32, #tpu.memory_space<vmem>>, vector<1x32xf32>
    %17 = vector.broadcast %16 : vector<1x32xf32> to vector<16x32xf32>
    %18 = arith.addf %15, %17 : vector<16x32xf32>
    %c0_13 = arith.constant 0 : index
    %c0_14 = arith.constant 0 : index
    %19 = vector.load %arg6[%c0_13, %c0_14] : memref<16x32xf32, #tpu.memory_space<vmem>>, vector<16x32xf32>
    tpu.vector_store %arg6[%c0_13, %c0_14], %18 {strides = array<i32>} : memref<16x32xf32, #tpu.memory_space<vmem>>, vector<16x32xf32>,
    return
  }
  func.func @transform_0(%arg0: i32) -> (i32, i32) {
    %c0_i32 = arith.constant 0 : i32
    %c0_i32_0 = arith.constant 0 : i32
    return %arg0, %c0_i32 : i32, i32
  }
  func.func @transform_1(%arg0: i32) -> (i32, i32) {
    %c0_i32 = arith.constant 0 : i32
    %c0_i32_0 = arith.constant 0 : i32
    %c0_i32_1 = arith.constant 0 : i32
    return %c0_i32, %c0_i32_0 : i32, i32
  }
  func.func @transform_2(%arg0: i32) -> (i32, i32) {
    %c0_i32 = arith.constant 0 : i32
    %c0_i32_0 = arith.constant 0 : i32
    %c0_i32_1 = arith.constant 0 : i32
    return %c0_i32, %c0_i32_0 : i32, i32
  }
  func.func @transform_3(%arg0: i32) -> (i32, i32) {
    %c0_i32 = arith.constant 0 : i32
    %c0_i32_0 = arith.constant 0 : i32
    %c0_i32_1 = arith.constant 0 : i32
    return %c0_i32, %c0_i32_0 : i32, i32
  }
  func.func @transform_4(%arg0: i32) -> (i32, i32) {
    %c0_i32 = arith.constant 0 : i32
    %c0_i32_0 = arith.constant 0 : i32
    %c0_i32_1 = arith.constant 0 : i32
    return %c0_i32, %c0_i32_0 : i32, i32
  }
  func.func @transform_5(%arg0: i32) -> (i32, i32) {
    %c0_i32 = arith.constant 0 : i32
    %c0_i32_0 = arith.constant 0 : i32
    return %arg0, %c0_i32 : i32, i32
  }
}

</mosaic_0001>

<bundles_post_ra>
// kernel: tpu_custom_call.1
= control target key start
LH: loop header
LB: loop body
LE: loop exit
PB: predicated region body
PF: predicated region fallthrough
CT: control target
= control target key end

     0   :  { %vm34_vm0 = vcmask 261120   ;;  %s508_s0 = inlined_call_operand.vmem [shape: f32[16,32], index: 0, kind: input, shape index: {}]   ;;  %s509_s1 = inlined_call_operand.vmem [shape: f32[32,128], index: 1, kind: input, shape index: {}]   ;;  %s510_s2 = inlined_call_operand.vmem [shape: f32[1,128], index: 2, kind: input, shape index: {}]   ;;  %s511_s3 = inlined_call_operand.vmem [shape: f32[128,32], index: 3, kind: input, shape index: {}]   ;;  %s512_s4 = inlined_call_operand.vmem [shape: f32[1,32], index: 4, kind: input, shape index: {}]   ;;  %s513_s5 = inlined_call_operand.hbm [shape: f32[16,32], index: 5, kind: output, shape index: {}]  }
   0x1   :  { %v23_v0 = vld [vmem:[%s509_s1] sm:$0xff]  ;;  %v24_v1 = vld [vmem:[%s509_s1 + $0x8] sm:$0xff]  ;;  %v25_v2 = vld [vmem:[%s509_s1 + $0x10] sm:$0xff] }
   0x2   :  { %v316_v3 = vpack.c.bf16 %v24_v1, %v23_v0  ;;  %v26_v4 = vld [vmem:[%s509_s1 + $0x18] sm:$0xff]  ;;  %v21_v5 = vld [vmem:[%s508_s0] sm:$0xff]  ;;  %v127_v8 = vld [vmem:[%s511_s3 + $0x8] sm:$0xff] }
   0x3   :  { %v320_v6 = vpack.c.bf16 %v26_v4, %v25_v2  ;;  %278 = vmatprep.mubr.msk.f32.mxu0 %vm34_vm0, %v21_v5  ;;  %v126_v7 = vld [vmem:[%s511_s3] sm:$0xff]  ;;  %v128_v9 = vld [vmem:[%s511_s3 + $0x10] sm:$0xff]  ;;  %v129_v11 = vld [vmem:[%s511_s3 + $0x18] sm:$0xff] }
   0x4   :  { %317 = vmatprep.subr.bf16.mxu0 %v316_v3  ;;  %v324_v10 = vpack.c.bf16 %v127_v8, %v126_v7  ;;  %v328_v12 = vpack.c.bf16 %v129_v11, %v128_v9  ;;  %v130_v13 = vld [vmem:[%s511_s3 + $0x20] sm:$0xff]  ;;  %v131_v14 = vld [vmem:[%s511_s3 + $0x28] sm:$0xff] }
   0x5   :  { %319 = vmatpush3.bf16.msra.mxu0 %v316_v3 }
   0x6   :  { %10 = vsyncpa [#allocation3], 0  ;;  %321 = vmatprep.subr.bf16.mxu0 %v320_v6  ;;  %325 = vmatprep.subr.bf16.mxu1 %v324_v10  ;;  %v332_v15 = vpack.c.bf16 %v131_v14, %v130_v13  ;;  %v22_v16 = vld [vmem:[%s508_s0 + $0x8] sm:$0xff]  ;;  %v132_v17 = vld [vmem:[%s511_s3 + $0x30] sm:$0xff]  ;;  %s387_s11 = smov [#allocation2]  }
   0x7   :  { %327 = vmatpush3.bf16.msra.mxu1 %v324_v10  ;;  %v133_v18 = vld [vmem:[%s511_s3 + $0x38] sm:$0xff]  ;;  %v134_v20 = vld [vmem:[%s511_s3 + $0x40] sm:$0xff]  ;;  %v135_v21 = vld [vmem:[%s511_s3 + $0x48] sm:$0xff]  ;;  %s231_s12 = sshll.u32 %s387_s11, 4  ;;  %s232_s12 = int_to_ptr.vmem [resolvable:$true] %s231_s12 }
   0x8   :  { %329 = vmatprep.subr.bf16.mxu1 %v328_v12  ;;  %v336_v19 = vpack.c.bf16 %v133_v18, %v132_v17  ;;  %v340_v22 = vpack.c.bf16 %v135_v21, %v134_v20  ;;  %v136_v23 = vld [vmem:[%s511_s3 + $0x50] sm:$0xff]  ;;  %v137_v24 = vld [vmem:[%s511_s3 + $0x58] sm:$0xff]  ;;  %v138_v26 = vld [vmem:[%s511_s3 + $0x60] sm:$0xff]  ;;  %s363_s13 = scalar_lea.vmem %s232_s12, 256  ;;  %p368_p1 = scmp.lt.s32.totalorder %s232_s12, %s232_s12 }
   0x9   :  { %323 = vmatpush3.bf16.msra.mxu0 %v320_v6  ;;  %v344_v25 = vpack.c.bf16 %v137_v24, %v136_v23  ;;  %v139_v27 = vld [vmem:[%s511_s3 + $0x68] sm:$0xff]  ;;  %v140_v29 = vld [vmem:[%s511_s3 + $0x70] sm:$0xff]  ;;  %v141_v30 = vld [vmem:[%s511_s3 + $0x78] sm:$0xff]  ;;  %p364_p0 = scmp.ne.s32.totalorder %s232_s12, %s363_s13  ;;  %p369_p2 = scmp.lt.s32.totalorder %s363_s13, %s363_s13 }
   0xa   :  { %v348_v28 = vpack.c.bf16 %v139_v27, %v138_v26  ;;  %v352_v31 = vpack.c.bf16 %v141_v30, %v140_v29  ;;  %v242_v32 = vld [vmem:[%s510_s2] ss:$0 sm:$0xff] }
   0xb   :  { %331 = vmatpush3.bf16.msra.mxu1 %v328_v12  ;;  %v245_v47 = vld [vmem:[%s512_s4] ss:$0 sm:$0xff]  ;;  %p370_p3 = por %p369_p2, %p368_p1 }
   0xc   :  { %279 = vmatmul.mubr.msk.f32.vlgmr.msra.gmra.mrb[0].mxu0 %vm34_vm0, %v22_v16  ;;  %333 = vmatprep.subr.bf16.mxu1 %v332_v15 }
   0xd   :  { %p371_p4 = pnand %p370_p3, %p364_p0 }
   0xf   :  { %335 = vmatpush3.bf16.msra.mxu1 %v332_v15 }
  0x10   :  { %337 = vmatprep.subr.bf16.mxu1 %v336_v19 }
  0x13   :  { %339 = vmatpush3.bf16.msra.mxu1 %v336_v19 }
  0x14   :  { %341 = vmatprep.subr.bf16.mxu1 %v340_v22 }
  0x17   :  { %343 = vmatpush3.bf16.msra.mxu1 %v340_v22 }
  0x18   :  { %345 = vmatprep.subr.bf16.mxu1 %v344_v25 }
  0x1b   :  { %347 = vmatpush3.bf16.msra.mxu1 %v344_v25 }
  0x1c   :  { %349 = vmatprep.subr.bf16.mxu1 %v348_v28 }
  0x1f   :  { %351 = vmatpush3.bf16.msra.mxu1 %v348_v28 }
  0x20   :  { %353 = vmatprep.subr.bf16.mxu1 %v352_v31 }
  0x23   :  { %355 = vmatpush3.bf16.msra.mxu1 %v352_v31 }
  0xdf   :  { %v280_v33 = vpop.f32.mrb[0].mxu0 }
  0xe0   :  { %v113_v34 = vadd.f32 %v280_v33, %v242_v32  ;;  %v107_v35 = vpop.f32.mrb[1].mxu0 }
  0xe1   :  { %v108_v36 = vadd.f32 %v242_v32, %v107_v35 }
  0xe2   :  { %v119_v37 = vmul.f32 0.70710677, %v113_v34  ;;  %v117_v44 = vmul.f32 0.5, %v113_v34 }
  0xe3   :  { %v118_v38 = vmul.f32 0.70710677, %v108_v36  ;;  %v116_v42 = vmul.f32 0.5, %v108_v36 }
  0xe4   :  { %359 = verf.f32 %v119_v37 }
  0xe5   :  { %361 = verf.f32 %v118_v38 }
  0xee   :  { %v360_v39 = vpop.eup %359 }
  0xef   :  { %v362_v40 = vpop.eup %361  ;;  %v123_v41 = vadd.f32 1.0, %v360_v39 }
  0xf0   :  { %v122_v43 = vadd.f32 1.0, %v362_v40 }
  0xf1   :  { %v125_v46 = vmul.f32 %v123_v41, %v117_v44 }
  0xf2   :  { %v124_v45 = vmul.f32 %v122_v43, %v116_v42 }
  0xf4   :  { %313 = vmatprep.mubr.f32.mxu1 %v124_v45 }
  0xf5   :  { %314 = vmatmul.mubr.f32.vlgmr.msra.gmra.mrb[0].mxu1 %v125_v46 }
 0x1c8   :  { %v315_v48 = vpop.f32.mrb[0].mxu1 }
 0x1c9   :  { %v221_v49 = vadd.f32 %v315_v48, %v245_v47  ;;  %v215_v50 = vpop.f32.mrb[1].mxu1 }
 0x1ca   :  { %v216_v51 = vadd.f32 %v245_v47, %v215_v50 }
 0x1cb   :  { %225 = vst.msk [vmem:[#allocation2 + $0x8] sm:$0xff] %vm34_vm0, %v221_v49 }
 0x1cc   :  { %224 = vst.msk [vmem:[#allocation2] sm:$0xff] %vm34_vm0, %v216_v51 }
 0x1cd   :  { %374 = shalt.err (!%p371_p4)
}
 0x1ce   :  { %s375_s15 = scalar_lea.hbm %s513_s5, 256 }
 0x1cf   :  { %p376_p5 = scmp.ne.s32.totalorder %s513_s5, %s375_s15  ;;  %p379_p6 = scmp.lt.u32.totalorder %s375_s15, %s513_s5 }
 0x1d1   :  { %p381_p7 = pnand %p379_p6, %p376_p5 }
 0x1d3   :  { %384 = shalt.err (!%p381_p7)
}
 0x1d4   :  { %s388_s20 = smov 128   ;;  %s389_s21 = smov 8  }
 0x1d5   :  { %237 = dma.vmem_to_hbm [thread:$0]  %s232_s12, 256, %s513_s5, [#allocation3], %s388_s20, %s388_s20, %s389_s21  }
 0x1d6   :  { %385 = dma.done.wait [#allocation3], 256  }
 0x1d7   :  { %386 = vsyncadd [#allocation3], 4294967040 }
 0x1d8   :  { %241 = vsyncpa [#allocation3], 1 }

</bundles_post_ra>
